<compile_context>
chip_gen: v5e
topology: v5e:2x2
jax: 0.10.0
libtpu: 0.0.40
codegen_flags: <defaults>
</compile_context>

<pallas_src>
import functools

import jax
import jax.numpy as jnp
from jax import lax
from jax.experimental import pallas as pl
from jax.experimental.pallas import tpu as pltpu


def _round_up(v, m):
    return ((v + m - 1) // m) * m


def _layout(h, w):
    """Static lane-layout constants for the padded-flat conv representation."""
    hp, wp = h + 2, w + 2
    nq = hp * wp                         # zero-padded spatial grid, flattened on lanes
    span = 2 * wp + 2                    # max 3x3 tap lane offset
    off_h1 = wp + 1                      # h1 content lane offset (forced by conv2 taps)
    off_x = _round_up(2 * (wp + 1), 128)  # x content offset in VMEM halo buf (aligned)
    tap1 = off_x - 2 * (wp + 1)          # conv1 tap base offset into the x buffer
    w2c = _round_up(nq, 128)                         # conv2 compute/store width
    w1c = _round_up(off_h1 + nq, 128)                # conv1 compute/store width
    wh1s = max(w1c, _round_up(w2c + span, 128))      # h1 VMEM scratch width
    wx = _round_up(max(off_x + nq, tap1 + span + w1c), 128)   # x VMEM scratch width
    return dict(hp=hp, wp=wp, nq=nq, span=span, off_h1=off_h1, off_x=off_x,
                tap1=tap1, w1c=w1c, w2c=w2c, wh1s=wh1s, wx=wx)


# --------------------------------------------------------------------------
# Fused conv1 -> ReLU -> conv2 kernel (block_b images per grid step).
# --------------------------------------------------------------------------
def _fused_forward_kernel(x_ref, w1_ref, b1_ref, w2_ref, b2_ref,
                          h1pre_ref, h2_ref,
                          xbuf, h1buf, stk1, stk2,
                          *, wp, h, w, nq, off_x, off_h1, tap1,
                          w1c, w2c, cin, cmid, cin_p, cmid_p, block_b):
    f32 = jnp.float32

    # Interior-of-image lane mask for the h1 buffer, generated from iotas
    # (no constant DMA, no integer div/mod): lane l is interior iff it falls
    # inside one of the h per-row ranges [off_h1 + wp*r + 1, off_h1 + wp*r + w].
    row = lax.broadcasted_iota(jnp.int32, (h, w1c), 0) + 1
    lane = lax.broadcasted_iota(jnp.int32, (h, w1c), 1)
    lo = off_h1 + wp * row + 1
    mask = jnp.max(((lane >= lo) & (lane <= lo + (w - 1))).astype(f32),
                   axis=0, keepdims=True)                       # (1, w1c)

    # Zero the halo buffers once per grid step.  The zero lanes double as the
    # implicit zero padding of the next conv and as the zero rows of the
    # channel-padded weight stacks.
    xbuf[...] = jnp.zeros_like(xbuf)
    h1buf[...] = jnp.zeros_like(h1buf)

    def conv3x3(src, stk, w_ref, b_ref, out_w, c_p, base):
        # Build the (9*c_p, out_w) stacked activation (9 lane-shifted copies of
        # the halo buffer), then ONE MXU matmul with K = 9*c_p.
        for t in range(9):
            di, dj = t // 3, t % 3
            s = base + di * wp + dj
            stk[t * c_p:(t + 1) * c_p, :] = src[:, s:s + out_w]
        return jnp.dot(w_ref[...], stk[...],
                       preferred_element_type=jnp.float32) + b_ref[...]

    for b in range(block_b):                            # unrolled per-image loop
        # copy this image's padded-flat activation into the zeroed halo buffer
        xbuf[0:cin, off_x:off_x + nq] = x_ref[b]
        a1 = conv3x3(xbuf, stk1, w1_ref, b1_ref, w1c, cin_p, tap1)   # conv1 (pre-ReLU)
        h1pre_ref[b] = a1                                            # hook capture
        # ReLU fused on the VPU; masked copy stays in VMEM and feeds conv2
        # (never round-trips HBM).
        h1buf[0:cmid, 0:w1c] = jnp.maximum(a1, 0.0) * mask
        h2_ref[b] = conv3x3(h1buf, stk2, w2_ref, b2_ref, w2c, cmid_p, 0)


def fused_conv_relu_conv(x, w1, b1, w2, b2, *, block_b=1):
    """x: (N,C,H,W) f32; w*: OIHW 3x3; b*: (Cout,).  Stride 1, pad 1.

    Returns padded-flat (conv1_pre_relu, conv2) lane-dense slabs; use
    pf_to_nchw() to recover NCHW for the hooked layer only.
    """
    n, cin, h, w = x.shape
    cmid = w1.shape[0]
    cout = w2.shape[0]
    assert w1.shape == (cmid, cin, 3, 3) and w2.shape == (cout, cmid, 3, 3)
    assert block_b >= 1 and n % block_b == 0
    lay = _layout(h, w)
    cin_p, cmid_p = _round_up(cin, 8), _round_up(cmid, 8)

    # Single wrapper-side prep: spatial zero-pad + flatten.  (The lane halo is
    # added in-kernel; no second HBM copy of x.)
    xp = jnp.pad(x, ((0, 0), (0, 0), (1, 1), (1, 1))).reshape(n, cin, lay["nq"])

    # Per-tap stacked weights (Cout, 9*Cin_pad); zero columns for channel pad.
    def stack_weights(wt, ci, ci_p):
        co = wt.shape[0]
        t = jnp.transpose(wt, (0, 2, 3, 1)).reshape(co, 9, ci)
        return jnp.pad(t, ((0, 0), (0, 0), (0, ci_p - ci))).reshape(co, 9 * ci_p)

    w1s = stack_weights(w1, cin, cin_p)        # (cmid, 9*cin_p)
    w2s = stack_weights(w2, cmid, cmid_p)      # (cout, 9*cmid_p)
    b1c = b1.reshape(cmid, 1)
    b2c = b2.reshape(cout, 1)

    kernel = functools.partial(
        _fused_forward_kernel,
        wp=lay["wp"], h=h, w=w, nq=lay["nq"],
        off_x=lay["off_x"], off_h1=lay["off_h1"], tap1=lay["tap1"],
        w1c=lay["w1c"], w2c=lay["w2c"],
        cin=cin, cmid=cmid, cin_p=cin_p, cmid_p=cmid_p, block_b=block_b)

    full = lambda a: pl.BlockSpec(a.shape, lambda i: (0,) * a.ndim)

    h1pre_pf, h2_pf = pl.pallas_call(
        kernel,
        out_shape=(
            jax.ShapeDtypeStruct((n, cmid, lay["w1c"]), jnp.float32),  # conv1 pre-ReLU
            jax.ShapeDtypeStruct((n, cout, lay["w2c"]), jnp.float32),  # conv2
        ),
        grid_spec=pltpu.PrefetchScalarGridSpec(
            num_scalar_prefetch=0,
            grid=(n // block_b,),                       # batch blocks (megacore parallel)
            in_specs=[
                pl.BlockSpec((block_b, cin, lay["nq"]), lambda i: (i, 0, 0)),
                full(w1s), full(b1c), full(w2s), full(b2c),
            ],
            out_specs=[
                pl.BlockSpec((block_b, cmid, lay["w1c"]), lambda i: (i, 0, 0)),
                pl.BlockSpec((block_b, cout, lay["w2c"]), lambda i: (i, 0, 0)),
            ],
            scratch_shapes=[
                pltpu.VMEM((cin_p, lay["wx"]), jnp.float32),       # x halo buffer
                pltpu.VMEM((cmid_p, lay["wh1s"]), jnp.float32),    # relu(conv1) buffer
                pltpu.VMEM((9 * cin_p, lay["w1c"]), jnp.float32),  # conv1 tap stack
                pltpu.VMEM((9 * cmid_p, lay["w2c"]), jnp.float32),  # conv2 tap stack
            ],
        ),
        compiler_params=pltpu.CompilerParams(dimension_semantics=("parallel",)),
    )(xp, w1s, b1c, w2s, b2c)

    return h1pre_pf, h2_pf


def pf_to_nchw(a_pf, h, w, off):
    """padded-flat (N, C, lanes) -> NCHW (N, C, h, w); conversion only for the
    layer that is actually hooked."""
    n, c, _ = a_pf.shape
    hp, wp = h + 2, w + 2
    a = a_pf[:, :, off:off + hp * wp].reshape(n, c, hp, wp)
    return a[:, :, 1:h + 1, 1:w + 1]


# --------------------------------------------------------------------------
# Synthetic model (stands in for the `model` argument of the extractor).
# --------------------------------------------------------------------------
class SimpleConvModel:
    """conv1(3x3,pad1) -> relu1 -> conv2(3x3,pad1), one fused Pallas call."""

    def __init__(self, key, cin=4, cmid=8, cout=8):
        k1, k2, k3, k4 = jax.random.split(key, 4)
        self.params = {
            "conv1": {"w": 0.1 * jax.random.normal(k1, (cmid, cin, 3, 3), jnp.float32),
                      "b": 0.1 * jax.random.normal(k2, (cmid,), jnp.float32)},
            "conv2": {"w": 0.1 * jax.random.normal(k3, (cout, cmid, 3, 3), jnp.float32),
                      "b": 0.1 * jax.random.normal(k4, (cout,), jnp.float32)},
        }
        self._modules = ["conv1", "relu1", "conv2"]   # mimics model._modules order
        self._jit_cache = {}

    @staticmethod
    def _pick_block_b(n):
        # Amortise per-grid-step overhead, but keep >=2 grid steps so both
        # v7x TensorCores get work under dimension_semantics=("parallel",).
        if n < 4:
            return 1
        b = min(8, n // 2)
        while n % b:
            b -= 1
        return max(b, 1)

    def _run_fused(self, x):
        p1, p2 = self.params["conv1"], self.params["conv2"]
        bb = self._pick_block_b(x.shape[0])
        return fused_conv_relu_conv(x, p1["w"], p1["b"], p2["w"], p2["b"],
                                    block_b=bb)

    def _capture_impl(self, layer_name, x):
        h, w = x.shape[2], x.shape[3]
        lay = _layout(h, w)
        h1pre_pf, h2_pf = self._run_fused(x)
        if layer_name == "conv1":
            return (x,), pf_to_nchw(h1pre_pf, h, w, lay["off_h1"])
        if layer_name == "relu1":
            h1pre = pf_to_nchw(h1pre_pf, h, w, lay["off_h1"])
            return (h1pre,), jnp.maximum(h1pre, 0.0)
        if layer_name == "conv2":
            h1r = jnp.maximum(pf_to_nchw(h1pre_pf, h, w, lay["off_h1"]), 0.0)
            return (h1r,), pf_to_nchw(h2_pf, h, w, 0)
        raise KeyError(layer_name)

    def forward_with_capture(self, x, layer_name):
        """Single fused forward; returns (inputs_tuple, output) of the hooked layer."""
        fn = self._jit_cache.get(("cap", layer_name))
        if fn is None:
            fn = jax.jit(functools.partial(self._capture_impl, layer_name))
            self._jit_cache[("cap", layer_name)] = fn
        return fn(x)

    def _forward_impl(self, x):
        h, w = x.shape[2], x.shape[3]
        _, h2_pf = self._run_fused(x)
        return pf_to_nchw(h2_pf, h, w, 0)

    def __call__(self, x):
        fn = self._jit_cache.get("fwd")
        if fn is None:
            fn = jax.jit(self._forward_impl)
            self._jit_cache["fwd"] = fn
        return fn(x)


# --------------------------------------------------------------------------
# HookBasedFeatureExtractor (JAX analogue of the PyTorch module).
# --------------------------------------------------------------------------
class HookBasedFeatureExtractor:
    def __init__(self, model, layer_name, upscale=False):
        self.model = model
        self.layer_name = layer_name
        self.upscale = upscale
        self.inputs = None
        self.inputs_size = None
        self.outputs = None
        self.outputs_size = None

    def forward(self, x):
        layer_inputs, layer_output = self.model.forward_with_capture(x, self.layer_name)
        # PyTorch forward hooks receive inputs as a tuple -> stored as a list.
        self.inputs = [jnp.asarray(t) for t in layer_inputs]
        self.inputs_size = [t.shape for t in self.inputs]
        self.outputs = layer_output
        self.outputs_size = layer_output.shape
        if self.upscale:
            # TODO(synk): bilinear rescale_output_array (nn.Upsample) not implemented; default upscale=False path.
            pass
        return (self.inputs, self.outputs)


# --------------------------------------------------------------------------
# Reference conv (plain JAX) for correctness checking.
# --------------------------------------------------------------------------
def conv2d_ref(x, w, b):
    out = lax.conv_general_dilated(
        x, w, window_strides=(1, 1), padding=((1, 1), (1, 1)),
        dimension_numbers=("NCHW", "OIHW", "NCHW"))
    return out + b.reshape(1, -1, 1, 1)


if __name__ == "__main__":
    key = jax.random.PRNGKey(0)
    kx, kmodel, kx8 = jax.random.split(key, 3)
    x = jax.random.normal(kx, (2, 4, 16, 16), jnp.float32)  # NCHW

    model = SimpleConvModel(kmodel)

    # Hook on conv2: inputs = relu(conv1(x)), outputs = conv2(relu(conv1(x))).
    extractor = HookBasedFeatureExtractor(model, layer_name="conv2", upscale=False)
    inputs, outputs = extractor.forward(x)
    inputs = [jax.block_until_ready(t) for t in inputs]
    outputs = jax.block_until_ready(outputs)

    # Reference forward pass (plain JAX) to verify the fused kernel.
    h1_want = conv2d_ref(x, model.params["conv1"]["w"], model.params["conv1"]["b"])
    h1r_want = jnp.maximum(h1_want, 0.0)
    h2_want = conv2d_ref(h1r_want, model.params["conv2"]["w"], model.params["conv2"]["b"])

    assert inputs[0].shape == (2, 8, 16, 16)
    assert outputs.shape == (2, 8, 16, 16)
    assert jnp.allclose(inputs[0], h1r_want, atol=1e-4, rtol=1e-4)
    assert jnp.allclose(outputs, h2_want, atol=1e-4, rtol=1e-4)

    # Hooking an earlier layer exercises the same fused kernel (lazy conversion).
    extractor_c1 = HookBasedFeatureExtractor(model, layer_name="conv1")
    c1_inputs, c1_out = extractor_c1.forward(x)
    c1_out = jax.block_until_ready(c1_out)
    assert jnp.allclose(c1_inputs[0], x)
    assert jnp.allclose(c1_out, h1_want, atol=1e-4, rtol=1e-4)

    # Larger batch exercises the batch-blocked path (block_b=4 -> grid=(2,)).
    x8 = jax.random.normal(kx8, (8, 4, 16, 16), jnp.float32)
    in8, out8 = HookBasedFeatureExtractor(model, layer_name="conv2").forward(x8)
    out8 = jax.block_until_ready(out8)
    h1r8 = jnp.maximum(conv2d_ref(x8, model.params["conv1"]["w"],
                                  model.params["conv1"]["b"]), 0.0)
    h2_8 = conv2d_ref(h1r8, model.params["conv2"]["w"], model.params["conv2"]["b"])
    assert jnp.allclose(in8[0], h1r8, atol=1e-4, rtol=1e-4)
    assert jnp.allclose(out8, h2_8, atol=1e-4, rtol=1e-4)

    print("KERNEL_OK")
</pallas_src>

<mosaic_0001>
module attributes {stable_mosaic.version = 11 : i64} {
  func.func @_fused_forward_kernel(%arg0: i32, %arg1: memref<1x4x324xf32, #tpu.memory_space<vmem>>, %arg2: memref<8x72xf32, #tpu.memory_space<vmem>>, %arg3: memref<8x1xf32, #tpu.memory_space<vmem>>, %arg4: memref<8x72xf32, #tpu.memory_space<vmem>>, %arg5: memref<8x1xf32, #tpu.memory_space<vmem>>, %arg6: memref<1x8x384xf32, #tpu.memory_space<vmem>>, %arg7: memref<1x8x384xf32, #tpu.memory_space<vmem>>, %arg8: memref<8x512xf32, #tpu.memory_space<vmem>>, %arg9: memref<8x512xf32, #tpu.memory_space<vmem>>, %arg10: memref<72x384xf32, #tpu.memory_space<vmem>>, %arg11: memref<72x384xf32, #tpu.memory_space<vmem>>) attributes {dimension_semantics = [#tpu.dimension_semantics<parallel>], iteration_bounds = array<i64: 2>, scalar_prefetch = 0 : i64, scratch_operands = 4 : i64, tpu.core_type = #tpu.core_type<tc>, window_params = [{transform_indices = @transform_0, window_bounds = array<i64: 1, 4, 324>}, {pipeline_mode = #tpu.pipeline_mode<synchronous>, transform_indices = @transform_1, window_bounds = array<i64: 8, 72>}, {pipeline_mode = #tpu.pipeline_mode<synchronous>, transform_indices = @transform_2, window_bounds = array<i64: 8, 1>}, {pipeline_mode = #tpu.pipeline_mode<synchronous>, transform_indices = @transform_3, window_bounds = array<i64: 8, 72>}, {pipeline_mode = #tpu.pipeline_mode<synchronous>, transform_indices = @transform_4, window_bounds = array<i64: 8, 1>}, {transform_indices = @transform_5, window_bounds = array<i64: 1, 8, 384>}, {transform_indices = @transform_6, window_bounds = array<i64: 1, 8, 384>}]} {
    %0 = tpu.iota {dimensions = array<i32: 0>} : vector<16x384xi32>
    %c1_i32 = arith.constant 1 : i32
    %1 = vector.broadcast %c1_i32 : i32 to vector<16x384xi32>
    %2 = arith.addi %0, %1 : vector<16x384xi32>
    %3 = tpu.iota {dimensions = array<i32: 1>} : vector<16x384xi32>
    %c18_i32 = arith.constant 18 : i32
    %4 = vector.broadcast %c18_i32 : i32 to vector<16x384xi32>
    %5 = arith.muli %4, %2 : vector<16x384xi32>
    %c19_i32 = arith.constant 19 : i32
    %6 = vector.broadcast %c19_i32 : i32 to vector<16x384xi32>
    %7 = arith.addi %6, %5 : vector<16x384xi32>
    %c1_i32_0 = arith.constant 1 : i32
    %8 = vector.broadcast %c1_i32_0 : i32 to vector<16x384xi32>
    %9 = arith.addi %7, %8 : vector<16x384xi32>
    %10 = arith.cmpi sge, %3, %9 : vector<16x384xi32>
    %c15_i32 = arith.constant 15 : i32
    %11 = vector.broadcast %c15_i32 : i32 to vector<16x384xi32>
    %12 = arith.addi %9, %11 : vector<16x384xi32>
    %13 = arith.cmpi sle, %3, %12 : vector<16x384xi32>
    %14 = arith.andi %10, %13 : vector<16x384xi1>
    %15 = arith.extui %14 : vector<16x384xi1> to vector<16x384xi32>
    %16 = arith.sitofp %15 : vector<16x384xi32> to vector<16x384xf32>
    %cst = arith.constant dense<0xFF800000> : vector<384xf32>
    %17 = vector.multi_reduction <maximumf>, %16, %cst [0] : vector<16x384xf32> to vector<384xf32>
    %18 = vector.shape_cast %17 : vector<384xf32> to vector<1x384xf32>
    %cst_1 = arith.constant 0.000000e+00 : f32
    %19 = vector.broadcast %cst_1 : f32 to vector<8x512xf32>
    %c0 = arith.constant 0 : index
    %c0_2 = arith.constant 0 : index
    %20 = vector.load %arg8[%c0, %c0_2] : memref<8x512xf32, #tpu.memory_space<vmem>>, vector<8x512xf32>
    tpu.vector_store %arg8[%c0, %c0_2], %19 {strides = array<i32>} : memref<8x512xf32, #tpu.memory_space<vmem>>, vector<8x512xf32>,
    %cst_3 = arith.constant 0.000000e+00 : f32
    %21 = vector.broadcast %cst_3 : f32 to vector<8x512xf32>
    %c0_4 = arith.constant 0 : index
    %c0_5 = arith.constant 0 : index
    %22 = vector.load %arg9[%c0_4, %c0_5] : memref<8x512xf32, #tpu.memory_space<vmem>>, vector<8x512xf32>
    tpu.vector_store %arg9[%c0_4, %c0_5], %21 {strides = array<i32>} : memref<8x512xf32, #tpu.memory_space<vmem>>, vector<8x512xf32>,
    %c0_6 = arith.constant 0 : index
    %c0_7 = arith.constant 0 : index
    %c0_8 = arith.constant 0 : index
    %23 = vector.load %arg1[%c0_6, %c0_7, %c0_8] : memref<1x4x324xf32, #tpu.memory_space<vmem>>, vector<1x4x324xf32>
    %24 = vector.shape_cast %23 : vector<1x4x324xf32> to vector<4x324xf32>
    %c0_9 = arith.constant 0 : index
    %c128 = arith.constant 128 : index
    %25 = vector.load %arg8[%c0_9, %c128] : memref<8x512xf32, #tpu.memory_space<vmem>>, vector<4x324xf32>
    tpu.vector_store %arg8[%c0_9, %c128], %24 {strides = array<i32>} : memref<8x512xf32, #tpu.memory_space<vmem>>, vector<4x324xf32>,
    %c0_10 = arith.constant 0 : index
    %c90 = arith.constant 90 : index
    %26 = vector.load %arg8[%c0_10, %c90] : memref<8x512xf32, #tpu.memory_space<vmem>>, vector<8x384xf32>
    %c0_11 = arith.constant 0 : index
    %c0_12 = arith.constant 0 : index
    %27 = vector.load %arg10[%c0_11, %c0_12] : memref<72x384xf32, #tpu.memory_space<vmem>>, vector<8x384xf32>
    tpu.vector_store %arg10[%c0_11, %c0_12], %26 {strides = array<i32>} : memref<72x384xf32, #tpu.memory_space<vmem>>, vector<8x384xf32>,
    %c0_13 = arith.constant 0 : index
    %c91 = arith.constant 91 : index
    %28 = vector.load %arg8[%c0_13, %c91] : memref<8x512xf32, #tpu.memory_space<vmem>>, vector<8x384xf32>
    %c8 = arith.constant 8 : index
    %c0_14 = arith.constant 0 : index
    %29 = vector.load %arg10[%c8, %c0_14] : memref<72x384xf32, #tpu.memory_space<vmem>>, vector<8x384xf32>
    tpu.vector_store %arg10[%c8, %c0_14], %28 {strides = array<i32>} : memref<72x384xf32, #tpu.memory_space<vmem>>, vector<8x384xf32>,
    %c0_15 = arith.constant 0 : index
    %c92 = arith.constant 92 : index
    %30 = vector.load %arg8[%c0_15, %c92] : memref<8x512xf32, #tpu.memory_space<vmem>>, vector<8x384xf32>
    %c16 = arith.constant 16 : index
    %c0_16 = arith.constant 0 : index
    %31 = vector.load %arg10[%c16, %c0_16] : memref<72x384xf32, #tpu.memory_space<vmem>>, vector<8x384xf32>
    tpu.vector_store %arg10[%c16, %c0_16], %30 {strides = array<i32>} : memref<72x384xf32, #tpu.memory_space<vmem>>, vector<8x384xf32>,
    %c0_17 = arith.constant 0 : index
    %c108 = arith.constant 108 : index
    %32 = vector.load %arg8[%c0_17, %c108] : memref<8x512xf32, #tpu.memory_space<vmem>>, vector<8x384xf32>
    %c24 = arith.constant 24 : index
    %c0_18 = arith.constant 0 : index
    %33 = vector.load %arg10[%c24, %c0_18] : memref<72x384xf32, #tpu.memory_space<vmem>>, vector<8x384xf32>
    tpu.vector_store %arg10[%c24, %c0_18], %32 {strides = array<i32>} : memref<72x384xf32, #tpu.memory_space<vmem>>, vector<8x384xf32>,
    %c0_19 = arith.constant 0 : index
    %c109 = arith.constant 109 : index
    %34 = vector.load %arg8[%c0_19, %c109] : memref<8x512xf32, #tpu.memory_space<vmem>>, vector<8x384xf32>
    %c32 = arith.constant 32 : index
    %c0_20 = arith.constant 0 : index
    %35 = vector.load %arg10[%c32, %c0_20] : memref<72x384xf32, #tpu.memory_space<vmem>>, vector<8x384xf32>
    tpu.vector_store %arg10[%c32, %c0_20], %34 {strides = array<i32>} : memref<72x384xf32, #tpu.memory_space<vmem>>, vector<8x384xf32>,
    %c0_21 = arith.constant 0 : index
    %c110 = arith.constant 110 : index
    %36 = vector.load %arg8[%c0_21, %c110] : memref<8x512xf32, #tpu.memory_space<vmem>>, vector<8x384xf32>
    %c40 = arith.constant 40 : index
    %c0_22 = arith.constant 0 : index
    %37 = vector.load %arg10[%c40, %c0_22] : memref<72x384xf32, #tpu.memory_space<vmem>>, vector<8x384xf32>
    tpu.vector_store %arg10[%c40, %c0_22], %36 {strides = array<i32>} : memref<72x384xf32, #tpu.memory_space<vmem>>, vector<8x384xf32>,
    %c0_23 = arith.constant 0 : index
    %c126 = arith.constant 126 : index
    %38 = vector.load %arg8[%c0_23, %c126] : memref<8x512xf32, #tpu.memory_space<vmem>>, vector<8x384xf32>
    %c48 = arith.constant 48 : index
    %c0_24 = arith.constant 0 : index
    %39 = vector.load %arg10[%c48, %c0_24] : memref<72x384xf32, #tpu.memory_space<vmem>>, vector<8x384xf32>
    tpu.vector_store %arg10[%c48, %c0_24], %38 {strides = array<i32>} : memref<72x384xf32, #tpu.memory_space<vmem>>, vector<8x384xf32>,
    %c0_25 = arith.constant 0 : index
    %c127 = arith.constant 127 : index
    %40 = vector.load %arg8[%c0_25, %c127] : memref<8x512xf32, #tpu.memory_space<vmem>>, vector<8x384xf32>
    %c56 = arith.constant 56 : index
    %c0_26 = arith.constant 0 : index
    %41 = vector.load %arg10[%c56, %c0_26] : memref<72x384xf32, #tpu.memory_space<vmem>>, vector<8x384xf32>
    tpu.vector_store %arg10[%c56, %c0_26], %40 {strides = array<i32>} : memref<72x384xf32, #tpu.memory_space<vmem>>, vector<8x384xf32>,
    %c0_27 = arith.constant 0 : index
    %c128_28 = arith.constant 128 : index
    %42 = vector.load %arg8[%c0_27, %c128_28] : memref<8x512xf32, #tpu.memory_space<vmem>>, vector<8x384xf32>
    %c64 = arith.constant 64 : index
    %c0_29 = arith.constant 0 : index
    %43 = vector.load %arg10[%c64, %c0_29] : memref<72x384xf32, #tpu.memory_space<vmem>>, vector<8x384xf32>
    tpu.vector_store %arg10[%c64, %c0_29], %42 {strides = array<i32>} : memref<72x384xf32, #tpu.memory_space<vmem>>, vector<8x384xf32>,
    %c0_30 = arith.constant 0 : index
    %c0_31 = arith.constant 0 : index
    %44 = vector.load %arg2[%c0_30, %c0_31] : memref<8x72xf32, #tpu.memory_space<vmem>>, vector<8x72xf32>
    %c0_32 = arith.constant 0 : index
    %c0_33 = arith.constant 0 : index
    %45 = vector.load %arg10[%c0_32, %c0_33] : memref<72x384xf32, #tpu.memory_space<vmem>>, vector<72x384xf32>
    %cst_34 = arith.constant dense<0.000000e+00> : vector<8x384xf32>
    %46 = tpu.matmul %44, %45, %cst_34 {dimension_numbers = #tpu.dot_dimension_numbers<[1], [0], [0], [1], [0, 0, 1, 1], [], []>} : vector<8x72xf32>, vector<72x384xf32>, vector<8x384xf32> -> vector<8x384xf32>
    %c0_35 = arith.constant 0 : index
    %c0_36 = arith.constant 0 : index
    %47 = vector.load %arg3[%c0_35, %c0_36] : memref<8x1xf32, #tpu.memory_space<vmem>>, vector<8x1xf32>
    %48 = vector.broadcast %47 : vector<8x1xf32> to vector<8x384xf32>
    %49 = arith.addf %46, %48 : vector<8x384xf32>
    %c0_37 = arith.constant 0 : index
    %c0_38 = arith.constant 0 : index
    %c0_39 = arith.constant 0 : index
    %50 = vector.load %arg6[%c0_37, %c0_38, %c0_39] : memref<1x8x384xf32, #tpu.memory_space<vmem>>, vector<1x8x384xf32>
    %51 = vector.shape_cast %50 : vector<1x8x384xf32> to vector<8x384xf32>
    %52 = vector.shape_cast %49 : vector<8x384xf32> to vector<1x8x384xf32>
    tpu.vector_store %arg6[%c0_37, %c0_38, %c0_39], %52 {strides = array<i32>} : memref<1x8x384xf32, #tpu.memory_space<vmem>>, vector<1x8x384xf32>,
    %cst_40 = arith.constant 0.000000e+00 : f32
    %53 = vector.broadcast %cst_40 : f32 to vector<8x384xf32>
    %54 = arith.maximumf %49, %53 : vector<8x384xf32>
    %55 = vector.broadcast %18 : vector<1x384xf32> to vector<8x384xf32>
    %56 = arith.mulf %54, %55 : vector<8x384xf32>
    %c0_41 = arith.constant 0 : index
    %c0_42 = arith.constant 0 : index
    %57 = vector.load %arg9[%c0_41, %c0_42] : memref<8x512xf32, #tpu.memory_space<vmem>>, vector<8x384xf32>
    tpu.vector_store %arg9[%c0_41, %c0_42], %56 {strides = array<i32>} : memref<8x512xf32, #tpu.memory_space<vmem>>, vector<8x384xf32>,
    %c0_43 = arith.constant 0 : index
    %c0_44 = arith.constant 0 : index
    %58 = vector.load %arg9[%c0_43, %c0_44] : memref<8x512xf32, #tpu.memory_space<vmem>>, vector<8x384xf32>
    %c0_45 = arith.constant 0 : index
    %c0_46 = arith.constant 0 : index
    %59 = vector.load %arg11[%c0_45, %c0_46] : memref<72x384xf32, #tpu.memory_space<vmem>>, vector<8x384xf32>
    tpu.vector_store %arg11[%c0_45, %c0_46], %58 {strides = array<i32>} : memref<72x384xf32, #tpu.memory_space<vmem>>, vector<8x384xf32>,
    %c0_47 = arith.constant 0 : index
    %c1 = arith.constant 1 : index
    %60 = vector.load %arg9[%c0_47, %c1] : memref<8x512xf32, #tpu.memory_space<vmem>>, vector<8x384xf32>
    %c8_48 = arith.constant 8 : index
    %c0_49 = arith.constant 0 : index
    %61 = vector.load %arg11[%c8_48, %c0_49] : memref<72x384xf32, #tpu.memory_space<vmem>>, vector<8x384xf32>
    tpu.vector_store %arg11[%c8_48, %c0_49], %60 {strides = array<i32>} : memref<72x384xf32, #tpu.memory_space<vmem>>, vector<8x384xf32>,
    %c0_50 = arith.constant 0 : index
    %c2 = arith.constant 2 : index
    %62 = vector.load %arg9[%c0_50, %c2] : memref<8x512xf32, #tpu.memory_space<vmem>>, vector<8x384xf32>
    %c16_51 = arith.constant 16 : index
    %c0_52 = arith.constant 0 : index
    %63 = vector.load %arg11[%c16_51, %c0_52] : memref<72x384xf32, #tpu.memory_space<vmem>>, vector<8x384xf32>
    tpu.vector_store %arg11[%c16_51, %c0_52], %62 {strides = array<i32>} : memref<72x384xf32, #tpu.memory_space<vmem>>, vector<8x384xf32>,
    %c0_53 = arith.constant 0 : index
    %c18 = arith.constant 18 : index
    %64 = vector.load %arg9[%c0_53, %c18] : memref<8x512xf32, #tpu.memory_space<vmem>>, vector<8x384xf32>
    %c24_54 = arith.constant 24 : index
    %c0_55 = arith.constant 0 : index
    %65 = vector.load %arg11[%c24_54, %c0_55] : memref<72x384xf32, #tpu.memory_space<vmem>>, vector<8x384xf32>
    tpu.vector_store %arg11[%c24_54, %c0_55], %64 {strides = array<i32>} : memref<72x384xf32, #tpu.memory_space<vmem>>, vector<8x384xf32>,
    %c0_56 = arith.constant 0 : index
    %c19 = arith.constant 19 : index
    %66 = vector.load %arg9[%c0_56, %c19] : memref<8x512xf32, #tpu.memory_space<vmem>>, vector<8x384xf32>
    %c32_57 = arith.constant 32 : index
    %c0_58 = arith.constant 0 : index
    %67 = vector.load %arg11[%c32_57, %c0_58] : memref<72x384xf32, #tpu.memory_space<vmem>>, vector<8x384xf32>
    tpu.vector_store %arg11[%c32_57, %c0_58], %66 {strides = array<i32>} : memref<72x384xf32, #tpu.memory_space<vmem>>, vector<8x384xf32>,
    %c0_59 = arith.constant 0 : index
    %c20 = arith.constant 20 : index
    %68 = vector.load %arg9[%c0_59, %c20] : memref<8x512xf32, #tpu.memory_space<vmem>>, vector<8x384xf32>
    %c40_60 = arith.constant 40 : index
    %c0_61 = arith.constant 0 : index
    %69 = vector.load %arg11[%c40_60, %c0_61] : memref<72x384xf32, #tpu.memory_space<vmem>>, vector<8x384xf32>
    tpu.vector_store %arg11[%c40_60, %c0_61], %68 {strides = array<i32>} : memref<72x384xf32, #tpu.memory_space<vmem>>, vector<8x384xf32>,
    %c0_62 = arith.constant 0 : index
    %c36 = arith.constant 36 : index
    %70 = vector.load %arg9[%c0_62, %c36] : memref<8x512xf32, #tpu.memory_space<vmem>>, vector<8x384xf32>
    %c48_63 = arith.constant 48 : index
    %c0_64 = arith.constant 0 : index
    %71 = vector.load %arg11[%c48_63, %c0_64] : memref<72x384xf32, #tpu.memory_space<vmem>>, vector<8x384xf32>
    tpu.vector_store %arg11[%c48_63, %c0_64], %70 {strides = array<i32>} : memref<72x384xf32, #tpu.memory_space<vmem>>, vector<8x384xf32>,
    %c0_65 = arith.constant 0 : index
    %c37 = arith.constant 37 : index
    %72 = vector.load %arg9[%c0_65, %c37] : memref<8x512xf32, #tpu.memory_space<vmem>>, vector<8x384xf32>
    %c56_66 = arith.constant 56 : index
    %c0_67 = arith.constant 0 : index
    %73 = vector.load %arg11[%c56_66, %c0_67] : memref<72x384xf32, #tpu.memory_space<vmem>>, vector<8x384xf32>
    tpu.vector_store %arg11[%c56_66, %c0_67], %72 {strides = array<i32>} : memref<72x384xf32, #tpu.memory_space<vmem>>, vector<8x384xf32>,
    %c0_68 = arith.constant 0 : index
    %c38 = arith.constant 38 : index
    %74 = vector.load %arg9[%c0_68, %c38] : memref<8x512xf32, #tpu.memory_space<vmem>>, vector<8x384xf32>
    %c64_69 = arith.constant 64 : index
    %c0_70 = arith.constant 0 : index
    %75 = vector.load %arg11[%c64_69, %c0_70] : memref<72x384xf32, #tpu.memory_space<vmem>>, vector<8x384xf32>
    tpu.vector_store %arg11[%c64_69, %c0_70], %74 {strides = array<i32>} : memref<72x384xf32, #tpu.memory_space<vmem>>, vector<8x384xf32>,
    %c0_71 = arith.constant 0 : index
    %c0_72 = arith.constant 0 : index
    %76 = vector.load %arg4[%c0_71, %c0_72] : memref<8x72xf32, #tpu.memory_space<vmem>>, vector<8x72xf32>
    %c0_73 = arith.constant 0 : index
    %c0_74 = arith.constant 0 : index
    %77 = vector.load %arg11[%c0_73, %c0_74] : memref<72x384xf32, #tpu.memory_space<vmem>>, vector<72x384xf32>
    %cst_75 = arith.constant dense<0.000000e+00> : vector<8x384xf32>
    %78 = tpu.matmul %76, %77, %cst_75 {dimension_numbers = #tpu.dot_dimension_numbers<[1], [0], [0], [1], [0, 0, 1, 1], [], []>} : vector<8x72xf32>, vector<72x384xf32>, vector<8x384xf32> -> vector<8x384xf32>
    %c0_76 = arith.constant 0 : index
    %c0_77 = arith.constant 0 : index
    %79 = vector.load %arg5[%c0_76, %c0_77] : memref<8x1xf32, #tpu.memory_space<vmem>>, vector<8x1xf32>
    %80 = vector.broadcast %79 : vector<8x1xf32> to vector<8x384xf32>
    %81 = arith.addf %78, %80 : vector<8x384xf32>
    %c0_78 = arith.constant 0 : index
    %c0_79 = arith.constant 0 : index
    %c0_80 = arith.constant 0 : index
    %82 = vector.load %arg7[%c0_78, %c0_79, %c0_80] : memref<1x8x384xf32, #tpu.memory_space<vmem>>, vector<1x8x384xf32>
    %83 = vector.shape_cast %82 : vector<1x8x384xf32> to vector<8x384xf32>
    %84 = vector.shape_cast %81 : vector<8x384xf32> to vector<1x8x384xf32>
    tpu.vector_store %arg7[%c0_78, %c0_79, %c0_80], %84 {strides = array<i32>} : memref<1x8x384xf32, #tpu.memory_space<vmem>>, vector<1x8x384xf32>,
    return
  }
  func.func @transform_0(%arg0: i32) -> (i32, i32, i32) {
    %c0_i32 = arith.constant 0 : i32
    %c0_i32_0 = arith.constant 0 : i32
    %c0_i32_1 = arith.constant 0 : i32
    return %arg0, %c0_i32, %c0_i32_0 : i32, i32, i32
  }
  func.func @transform_1(%arg0: i32) -> (i32, i32) {
    %c0_i32 = arith.constant 0 : i32
    %c0_i32_0 = arith.constant 0 : i32
    %c0_i32_1 = arith.constant 0 : i32
    return %c0_i32, %c0_i32_0 : i32, i32
  }
  func.func @transform_2(%arg0: i32) -> (i32, i32) {
    %c0_i32 = arith.constant 0 : i32
    %c0_i32_0 = arith.constant 0 : i32
    %c0_i32_1 = arith.constant 0 : i32
    return %c0_i32, %c0_i32_0 : i32, i32
  }
  func.func @transform_3(%arg0: i32) -> (i32, i32) {
    %c0_i32 = arith.constant 0 : i32
    %c0_i32_0 = arith.constant 0 : i32
    %c0_i32_1 = arith.constant 0 : i32
    return %c0_i32, %c0_i32_0 : i32, i32
  }
  func.func @transform_4(%arg0: i32) -> (i32, i32) {
    %c0_i32 = arith.constant 0 : i32
    %c0_i32_0 = arith.constant 0 : i32
    %c0_i32_1 = arith.constant 0 : i32
    return %c0_i32, %c0_i32_0 : i32, i32
  }
  func.func @transform_5(%arg0: i32) -> (i32, i32, i32) {
    %c0_i32 = arith.constant 0 : i32
    %c0_i32_0 = arith.constant 0 : i32
    %c0_i32_1 = arith.constant 0 : i32
    return %arg0, %c0_i32, %c0_i32_0 : i32, i32, i32
  }
  func.func @transform_6(%arg0: i32) -> (i32, i32, i32) {
    %c0_i32 = arith.constant 0 : i32
    %c0_i32_0 = arith.constant 0 : i32
    %c0_i32_1 = arith.constant 0 : i32
    return %arg0, %c0_i32, %c0_i32_0 : i32, i32, i32
  }
}

</mosaic_0001>

<bundles_post_ra>
// kernel: _capture_impl.1
= control target key start
LH: loop header
LB: loop body
LE: loop exit
PB: predicated region body
PF: predicated region fallthrough
CT: control target
= control target key end

     0   :  { %s1357_s21 = smov 0   ;;  %s1500_s0 = inlined_call_operand.vmem [shape: f32[2,4,324], index: 0, kind: input, shape index: {}]   ;;  %s1501_s1 = inlined_call_operand.vmem [shape: f32[8,72], index: 1, kind: input, shape index: {}]   ;;  %s1502_s2 = inlined_call_operand.vmem [shape: f32[8,1], index: 2, kind: input, shape index: {}]   ;;  %s1503_s3 = inlined_call_operand.vmem [shape: f32[8,72], index: 3, kind: input, shape index: {}]   ;;  %s1504_s4 = inlined_call_operand.vmem [shape: f32[8,1], index: 4, kind: input, shape index: {}]   ;;  %s1505_s5 = inlined_call_operand.vmem [shape: f32[2,8,384], index: 5, kind: output, shape index: {0}]   ;;  %s1506_s6 = inlined_call_operand.vmem [shape: f32[2,8,384], index: 6, kind: output, shape index: {1}]  }
   0x1 LB: > { %s1084_s22 = sadd.s32 4294967295, %s1302_s21   ;;  %p1088_p0 = scmp.ge.s32.totalorder %s1302_s21, 1  ;;  %s1302_s21 = sphi %s1357_s21, %s17_s21  }
   0x2   : > { %p215_p1 = scmp.lt.s32.totalorder %s1302_s21, 3 }
   0x4   : > { %p216_p2 = pnand %p1088_p0, %p215_p1 }
   0x5   : > { %p250_p3 = scmp.lt.s32.totalorder (!%p216_p2), %s1084_s22, 1  ;;  %s1305_s27 = smov (!%p216_p2), 1  }
   0x6   : > { %219 = sbr.rel (%p216_p2) target bundleno = 614 (0x266), region = 40  ;;  %s1306_s28 = smov (!%p216_p2), 2  }
   0x7   : > { %s1307_s29 = smov (!%p216_p2), 18   ;;  %s1308_s30 = smov (!%p216_p2), 19  }
   0x8   : > { %s1309_s7 = smov (!%p216_p2), 20   ;;  %s1310_s8 = smov (!%p216_p2), 36  }
   0x9   : > { %s1311_s9 = smov (!%p216_p2), 37   ;;  %s1312_s10 = smov (!%p216_p2), 38  }
   0xa   : > { %s1314_s19 = smov (!%p216_p2), 92   ;;  %s1315_s20 = smov (!%p216_p2), 91  }
   0xb   : > { %s1508_s22 = smov (!%p250_p3, %s1084_s22), 1  ;;  %v1304_v0 = vmov 0.0   ;;  %vm356_vm0 = vcmask 551936   ;;  %vm556_vm1 = vcmask 7168   ;;  %vm530_vm2 = vcmask 15360   ;;  %v600_v38 = vld [vmem:[%s1502_s2] sm:$0xff] }
   0xc   : > { %334 = vst [vmem:[#allocation2 + $0x8] sm:$0xff] %v1304_v0  ;;  %s1106_s23 = smul.u32 12, %s1508_s22  ;;  %vm504_vm3 = vcmask 146432   ;;  %v1313_v42 = vmov 0   ;;  %vm478_vm4 = vcmask 154624   ;;  %vm452_vm5 = vcmask 162816  }
   0xd   : > { %335 = vst [vmem:[#allocation2 + $0x10] sm:$0xff] %v1304_v0  ;;  %1214 = vset.pattern.permute.xlu1 %v1313_v42  ;;  %1295 = vset.pattern.permute.xlu0 %v1313_v42  ;;  %vm426_vm6 = vcmask 293888   ;;  %vm400_vm7 = vcmask 302080   ;;  %vm374_vm8 = vcmask 310272   ;;  %vm606_vm9 = vcmask 588800   ;;  %s1107_s15 = smul.u32 24, %s1508_s22 }
   0xe   : > { %336 = vst [vmem:[#allocation2 + $0x18] sm:$0xff] %v1304_v0  ;;  %s254_s26 = scalar_lea.vmem %s1500_s0, %s1106_s23  ;;  %s1316_s23 = smov 90  }
   0xf   : > { %v341_v1 = vld [vmem:[%s254_s26] sm:$0xff]  ;;  %v342_v2 = vld [vmem:[%s254_s26 + $0x8] sm:$0xf]  ;;  %s259_s18 = scalar_lea.vmem %s1505_s5, %s1107_s15  ;;  %s1317_s24 = smov 109  }
  0x10   : > { %345 = vst [vmem:[#allocation1] ss:$2 sm:$0xff] %v341_v1  ;;  %s1318_s25 = smov 110   ;;  %s1319_s26 = smov 108  }
  0x11   : > { %347 = vst [vmem:[#allocation1 + $0x10] ss:$2 sm:$0xff] %v342_v2  ;;  %s264_s11 = scalar_lea.vmem %s1506_s6, %s1107_s15 }
  0x17   : > { %v348_v3 = vld.sshfl [vmem:[#allocation1] sm:$0xff pattern:$0x75316420]  ;;  %v349_v4 = vld.sshfl [vmem:[#allocation1 + $0x8] sm:$0xff pattern:$0x75316420] }
  0x18   : > { %354 = vst [vmem:[#allocation2 + $0x8] sm:$0xf] %v348_v3  ;;  %v350_v5 = vld.sshfl [vmem:[#allocation1 + $0x10] sm:$0xff pattern:$0x75316420] }
  0x19   : > { %355 = vst [vmem:[#allocation2 + $0x10] sm:$0xf] %v349_v4 }
  0x1a   : > { %357 = vst.msk [vmem:[#allocation2 + $0x18] sm:$0xf] %vm356_vm0, %v350_v5 }
  0x1f   : > { %v541_v6 = vld [vmem:[#allocation2 + $0x8] sm:$0xff] }
  0x20   : > { %v1134_v7 = vpack.i.bf16 %v541_v6, %v1304_v0  ;;  %v542_v8 = vld [vmem:[#allocation2 + $0x10] sm:$0xff]  ;;  %617 = vmatpush.msra.mxu0 %v541_v6 }
  0x21   : > { %637 = vmatpush.msra.mxu1 %v542_v8  ;;  %v543_v9 = vld [vmem:[#allocation2 + $0x18] sm:$0xff] }
  0x22   : > { %1135 = vrot.lane.b32.xlu0 %v1134_v7, %s1305_s27  ;;  %1145 = vrot.lane.b32.xlu1 %v1134_v7, %s1306_s28  ;;  %v1139_v10 = vpack.i.bf16 %v543_v9, %v542_v8 }
  0x23   : > { %1155 = vrot.lane.b32.xlu2 %v1134_v7, %s1307_s29  ;;  %657 = vmatpush.msra.mxu2 %v543_v9 }
  0x2a   : > { %1140 = vrot.lane.b32.xlu0 %v1139_v10, %s1305_s27  ;;  %1150 = vrot.lane.b32.xlu1 %v1139_v10, %s1306_s28  ;;  %s1320_s27 = smov 127   ;;  %s1321_s28 = smov 126  }
  0x2b   : > { %1160 = vrot.lane.b32.xlu2 %v1139_v10, %s1307_s29 }
  0x32   : > { %1170 = vrot.lane.b32.xlu1 %v1139_v10, %s1308_s30  ;;  %1165 = vrot.lane.b32.xlu0 %v1134_v7, %s1308_s30 }
  0x33   : > { %1175 = vrot.lane.b32.xlu2 %v1134_v7, %s1309_s7 }
  0x3a   : > { %1180 = vrot.lane.b32.xlu0 %v1139_v10, %s1309_s7  ;;  %1185 = vrot.lane.b32.xlu1 %v1134_v7, %s1310_s8 }
  0x3b   : > { %1190 = vrot.lane.b32.xlu2 %v1139_v10, %s1310_s8 }
  0x42   : > { %1200 = vrot.lane.b32.xlu1 %v1139_v10, %s1311_s9  ;;  %1195 = vrot.lane.b32.xlu0 %v1134_v7, %s1311_s9 }
  0x43   : > { %1205 = vrot.lane.b32.xlu2 %v1134_v7, %s1312_s10 }
  0x4a   : > { %1210 = vrot.lane.b32.xlu0 %v1139_v10, %s1312_s10  ;;  %603 = vperm.xlu1 %1214, %v600_v38  }
  0x7d   : > { %v1156_v11 = vpop.permute.xlu2 %1155 }
  0x7e   : > { %v1158_v14 = vunpack.i.h.bf16 %v1156_v11  ;;  %v1157_v15 = vunpack.i.l.bf16 %v1156_v11 }
  0x80   : > { %v505_v23 = vsel %vm504_vm3, %v1157_v15, %v1158_v14 }
  0x85   : > { %v1161_v20 = vpop.permute.xlu2 %1160 }
  0x86   : > { %v1163_v26 = vunpack.i.h.bf16 %v1161_v20  ;;  %v1162_v32 = vunpack.i.l.bf16 %v1161_v20 }
  0x88   : > { %v507_v37 = vsel %vm504_vm3, %v1162_v32, %v1163_v26  ;;  %v506_v39 = vsel %vm504_vm3, %v1158_v14, %v1162_v32 }
  0x8d   : > { %v1176_v31 = vpop.permute.xlu2 %1175 }
  0x8e   : > { %v1178_v40 = vunpack.i.h.bf16 %v1176_v31  ;;  %v1177_v41 = vunpack.i.l.bf16 %v1176_v31 }
  0x90   : > { %v453_v52 = vsel %vm452_vm5, %v1177_v41, %v1178_v40 }
  0x94   : > { %v1136_v12 = vpop.permute.xlu0 %1135  ;;  %v1146_v13 = vpop.permute.xlu1 %1145 }
  0x95   : > { %v1138_v16 = vunpack.i.h.bf16 %v1136_v12  ;;  %v1137_v17 = vunpack.i.l.bf16 %v1136_v12  ;;  %v1148_v18 = vunpack.i.h.bf16 %v1146_v13  ;;  %v1147_v19 = vunpack.i.l.bf16 %v1146_v13  ;;  %v1191_v53 = vpop.permute.xlu2 %1190 }
  0x96   : > { %v1193_v54 = vunpack.i.h.bf16 %v1191_v53  ;;  %v1192_v55 = vunpack.i.l.bf16 %v1191_v53 }
  0x97   : > { %v557_v21 = vsel %vm556_vm1, %v1137_v17, %v1138_v16  ;;  %v531_v22 = vsel %vm530_vm2, %v1147_v19, %v1148_v18  ;;  %v572_v17 = vld [vmem:[%s1501_s1] sm:$0xff] }
  0x98   : > { %618 = vmatpush.msra.mxu0 %v557_v21  ;;  %v429_v62 = vsel %vm426_vm6, %v1192_v55, %v1193_v54 }
  0x9a   : > { %619 = vmatpush.msra.mxu0 %v531_v22 }
  0x9c   : > { %v1141_v24 = vpop.permute.xlu0 %1140  ;;  %v1151_v25 = vpop.permute.xlu1 %1150  ;;  %620 = vmatpush.msra.mxu0 %v505_v23  ;;  %v265_v23 = vlaneseq }
  0x9d   : > { %v1143_v27 = vunpack.i.h.bf16 %v1141_v24  ;;  %v1142_v28 = vunpack.i.l.bf16 %v1141_v24  ;;  %v1153_v29 = vunpack.i.h.bf16 %v1151_v25  ;;  %v1152_v30 = vunpack.i.l.bf16 %v1151_v25  ;;  %v1206_v4 = vpop.permute.xlu2 %1205 }
  0x9e   : > { %v1208_v5 = vunpack.i.h.bf16 %v1206_v4  ;;  %v1207_v6 = vunpack.i.l.bf16 %v1206_v4  ;;  %v266_v24 = vshrl.u32 %v265_v23, 7 }
  0x9f   : > { %v558_v33 = vsel %vm556_vm1, %v1138_v16, %v1142_v28  ;;  %v559_v34 = vsel %vm556_vm1, %v1142_v28, %v1143_v27  ;;  %v533_v35 = vsel %vm530_vm2, %v1152_v30, %v1153_v29  ;;  %v532_v36 = vsel %vm530_vm2, %v1148_v18, %v1152_v30 }
  0xa0   : > { %638 = vmatpush.msra.mxu1 %v558_v33  ;;  %658 = vmatpush.msra.mxu2 %v559_v34  ;;  %v375_v16 = vsel %vm374_vm8, %v1207_v6, %v1208_v5  ;;  %v267_v25 = vadd.s32 8, %v266_v24  ;;  %v268_v26 = vadd.s32 1, %v266_v24  ;;  %v271_v34 = vand.u32 127, %v265_v23 }
  0xa2   : > { %639 = vmatpush.msra.mxu1 %v532_v36  ;;  %659 = vmatpush.msra.mxu2 %v533_v35  ;;  %v269_v27 = vadd.s32 1, %v267_v25  ;;  %v274_v28 = vmul.u32 18, %v268_v26 }
  0xa4   : > { %v1171_v43 = vpop.permute.xlu1 %1170  ;;  %640 = vmatpush.msra.mxu1 %v506_v39  ;;  %v1166_v44 = vpop.permute.xlu0 %1165  ;;  %660 = vmatpush.msra.mxu2 %v507_v37  ;;  %v275_v29 = vmul.u32 18, %v269_v27  ;;  %v276_v30 = vadd.s32 19, %v274_v28  ;;  %v272_v37 = vadd.s32 128, %v271_v34 }
  0xa5   : > { %v1173_v45 = vunpack.i.h.bf16 %v1171_v43  ;;  %v1172_v46 = vunpack.i.l.bf16 %v1171_v43  ;;  %v1168_v47 = vunpack.i.h.bf16 %v1166_v44  ;;  %v1167_v48 = vunpack.i.l.bf16 %v1166_v44 }
  0xa6   : > { %v277_v31 = vadd.s32 19, %v275_v29  ;;  %v278_v32 = vadd.s32 1, %v276_v30  ;;  %v273_v44 = vadd.s32 256, %v271_v34 }
  0xa7   : > { %v479_v49 = vsel %vm478_vm4, %v1167_v48, %v1168_v47  ;;  %v480_v50 = vsel %vm478_vm4, %v1168_v47, %v1172_v46  ;;  %v481_v51 = vsel %vm478_vm4, %v1172_v46, %v1173_v45 }
  0xa8   : > { %621 = vmatpush.msra.mxu0 %v479_v49  ;;  %641 = vmatpush.msra.mxu1 %v480_v50  ;;  %v279_v33 = vadd.s32 1, %v277_v31  ;;  %v286_v35 = vadd.s32 15, %v278_v32  ;;  %vm280_vm10 = vcmp.ge.s32.totalorder %v271_v34, %v278_v32  ;;  %vm281_vm14 = vcmp.ge.s32.totalorder %v272_v37, %v278_v32 }
  0xa9   : > { %661 = vmatpush.msra.mxu2 %v481_v51 }
  0xaa   : > { %622 = vmatpush.msra.mxu0 %v453_v52  ;;  %v287_v36 = vadd.s32 15, %v279_v33  ;;  %vm288_vm11 = vcmp.le.s32.totalorder %v271_v34, %v286_v35  ;;  %vm283_vm12 = vcmp.ge.s32.totalorder %v271_v34, %v279_v33  ;;  %vm289_vm15 = vcmp.le.s32.totalorder %v272_v37, %v286_v35 }
  0xab   : > { %vm294_vm0 = vmand %vm280_vm10, %vm288_vm11  ;;  %vm284_vm1 = vcmp.ge.s32.totalorder %v272_v37, %v279_v33 }
  0xac   : > { %v1181_v56 = vpop.permute.xlu0 %1180  ;;  %v1186_v57 = vpop.permute.xlu1 %1185  ;;  %vm291_vm13 = vcmp.le.s32.totalorder %v271_v34, %v287_v36  ;;  %vm292_vm2 = vcmp.le.s32.totalorder %v272_v37, %v287_v36  ;;  %vm295_vm4 = vmand %vm281_vm14, %vm289_vm15  ;;  %v1092_v38 = vsel %vm294_vm0, 1.0, %v1304_v0  ;;  %vm293_vm10 = vcmp.le.s32.totalorder %v273_v44, %v287_v36 }
  0xad   : > { %v1183_v58 = vunpack.i.h.bf16 %v1181_v56  ;;  %v1182_v59 = vunpack.i.l.bf16 %v1181_v56  ;;  %v1188_v60 = vunpack.i.h.bf16 %v1186_v57  ;;  %v1187_v61 = vunpack.i.l.bf16 %v1186_v57  ;;  %vm297_vm3 = vmand %vm283_vm12, %vm291_vm13 }
  0xae   : > { %v1095_v39 = vsel %vm297_vm3, 1.0, %v1304_v0  ;;  %vm886_vm13 = vcmask 736256   ;;  %vm860_vm14 = vcmask 744448   ;;  %vm834_vm15 = vcmask 752640  }
  0xaf   : > { %v454_v63 = vsel %vm452_vm5, %v1178_v40, %v1182_v59  ;;  %v455_v1 = vsel %vm452_vm5, %v1182_v59, %v1183_v58  ;;  %v427_v2 = vsel %vm426_vm6, %v1187_v61, %v1188_v60  ;;  %v428_v3 = vsel %vm426_vm6, %v1188_v60, %v1192_v55  ;;  %vm298_vm5 = vmand %vm284_vm1, %vm292_vm2 }
  0xb0   : > { %642 = vmatpush.msra.mxu1 %v454_v63  ;;  %662 = vmatpush.msra.mxu2 %v455_v1  ;;  %v1093_v40 = vsel %vm295_vm4, 1.0, %v1304_v0  ;;  %v1096_v41 = vsel %vm298_vm5, 1.0, %v1304_v0  ;;  %v312_v42 = vmax.f32 %v1092_v38, %v1095_v39  ;;  %vm282_vm6 = vcmp.ge.s32.totalorder %v273_v44, %v278_v32 }
  0xb1   : > { %623 = vmatpush.msra.mxu0 %v427_v2  ;;  %v319_v43 = vmax.f32 %v1093_v40, %v1096_v41  ;;  %vm808_vm0 = vcmask 883712   ;;  %vm782_vm1 = vcmask 891904   ;;  %vm756_vm2 = vcmask 900096  }
  0xb2   : > { %643 = vmatpush.msra.mxu1 %v428_v3  ;;  %663 = vmatpush.msra.mxu2 %v429_v62  ;;  %v313_v45 = vrot.slane %v312_v42, 4  ;;  %vm730_vm3 = vcmask 1031168   ;;  %vm704_vm4 = vcmask 1039360  }
  0xb3   : > { %v320_v46 = vrot.slane %v319_v43, 4 }
  0xb4   : > { %v1201_v7 = vpop.permute.xlu1 %1200  ;;  %v1196_v8 = vpop.permute.xlu0 %1195  ;;  %v314_v47 = vmax.f32 %v312_v42, %v313_v45 }
  0xb5   : > { %v1203_v9 = vunpack.i.h.bf16 %v1201_v7  ;;  %v1202_v10 = vunpack.i.l.bf16 %v1201_v7  ;;  %v1198_v11 = vunpack.i.h.bf16 %v1196_v8  ;;  %v1197_v12 = vunpack.i.l.bf16 %v1196_v8 }
  0xb6   : > { %v321_v48 = vmax.f32 %v319_v43, %v320_v46  ;;  %v315_v49 = vrot.slane %v314_v47, 2 }
  0xb7   : > { %v401_v13 = vsel %vm400_vm7, %v1197_v12, %v1198_v11  ;;  %v402_v14 = vsel %vm400_vm7, %v1198_v11, %v1202_v10  ;;  %v403_v15 = vsel %vm400_vm7, %v1202_v10, %v1203_v9  ;;  %vm290_vm7 = vcmp.le.s32.totalorder %v273_v44, %v286_v35 }
  0xb8   : > { %624 = vmatpush.msra.mxu0 %v401_v13  ;;  %644 = vmatpush.msra.mxu1 %v402_v14  ;;  %vm296_vm11 = vmand %vm282_vm6, %vm290_vm7  ;;  %v322_v52 = vrot.slane %v321_v48, 2  ;;  %v316_v53 = vmax.f32 %v314_v47, %v315_v49 }
  0xb9   : > { %664 = vmatpush.msra.mxu2 %v403_v15  ;;  %v1094_v50 = vsel %vm296_vm11, 1.0, %v1304_v0 }
  0xba   : > { %625 = vmatpush.msra.mxu0 %v375_v16  ;;  %v323_v56 = vmax.f32 %v321_v48, %v322_v52  ;;  %v317_v58 = vrot.slane %v316_v53, 1 }
  0xbb   : > { %1098 = vmatmul.msk.f32.vlgmr.msra.gmra.mxu0 %vm606_vm9, %v572_v17 }
  0xbc   : > { %v1211_v18 = vpop.permute.xlu0 %1210  ;;  %v604_v55 = vpop.permute.xlu1 %603  ;;  %v324_v61 = vrot.slane %v323_v56, 1  ;;  %v318_v62 = vmax.f32 %v316_v53, %v317_v58  ;;  %v896_v58 = vld [vmem:[%s1503_s3] sm:$0xff] }
  0xbd   : > { %v1213_v19 = vunpack.i.h.bf16 %v1211_v18  ;;  %v1212_v20 = vunpack.i.l.bf16 %v1211_v18 }
  0xbe   : > { %v325_v2 = vmax.f32 %v323_v56, %v324_v61 }
  0xbf   : > { %v376_v21 = vsel %vm374_vm8, %v1208_v5, %v1212_v20  ;;  %v377_v22 = vsel %vm374_vm8, %v1212_v20, %v1213_v19  ;;  %vm285_vm8 = vcmp.ge.s32.totalorder %v273_v44, %v279_v33  ;;  %v924_v44 = vld [vmem:[%s1504_s4] sm:$0xff] }
  0xc0   : > { %645 = vmatpush.msra.mxu1 %v376_v21  ;;  %665 = vmatpush.msra.mxu2 %v377_v22  ;;  %vm299_vm12 = vmand %vm285_vm8, %vm293_vm10 }
  0xc1   : > { %1099 = vmatmul.msk.f32.vlgmr.msra.gmra.mxu1 %vm606_vm9, %v572_v17  ;;  %1100 = vmatmul.msk.f32.vlgmr.msra.gmra.mxu2 %vm606_vm9, %v572_v17  ;;  %v1097_v51 = vsel %vm299_vm12, 1.0, %v1304_v0 }
  0xc2   : > { %v326_v54 = vmax.f32 %v1094_v50, %v1097_v51 }
  0xc4   : > { %v327_v60 = vrot.slane %v326_v54, 4 }
  0xc6   : > { %v328_v0 = vmax.f32 %v326_v54, %v327_v60 }
  0xc8   : > { %v329_v6 = vrot.slane %v328_v0, 2 }
  0xca   : > { %v330_v9 = vmax.f32 %v328_v0, %v329_v6 }
  0xcc   : > { %v331_v12 = vrot.slane %v330_v9, 1 }
  0xce   : > { %v332_v13 = vmax.f32 %v330_v9, %v331_v12 }
 0x138   : > { %v627_v57 = vpop.f32.mrf.mxu0 }
 0x139   : > { %v628_v59 = vadd.f32 %v627_v57, %v604_v55 }
 0x13b   : > { %670 = vst [vmem:[%s259_s18] sm:$0xff] %v628_v59  ;;  %v673_v63 = vmax.f32 %v628_v59, 0.0 }
 0x13d   : > { %v1411_v4 = vmul.f32 %v673_v63, %v318_v62 }
 0x13e   : > { %v647_v1 = vpop.f32.mrf.mxu1 }
 0x13f   : > { %v648_v3 = vadd.f32 %v647_v1, %v604_v55 }
 0x141   : > { %671 = vst [vmem:[%s259_s18 + $0x8] sm:$0xff] %v648_v3  ;;  %v674_v5 = vmax.f32 %v648_v3, 0.0 }
 0x143   : > { %v1413_v7 = vmul.f32 %v674_v5, %v325_v2 }
 0x144   : > { %v667_v8 = vpop.f32.mrf.mxu2 }
 0x145   : > { %v668_v10 = vadd.f32 %v667_v8, %v604_v55  ;;  %v1225_v11 = vpack.i.bf16 %v1413_v7, %v1411_v4 }
 0x147   : > { %672 = vst [vmem:[%s259_s18 + $0x10] sm:$0xff] %v668_v10  ;;  %1226 = vrot.lane.b32.xlu1 %v1225_v11, %s1314_s19  ;;  %1221 = vrot.lane.b32.xlu0 %v1225_v11, %s1315_s20  ;;  %v675_v14 = vmax.f32 %v668_v10, 0.0 }
 0x148   : > { %1216 = vrot.lane.b32.xlu2 %v1225_v11, %s1316_s23 }
 0x149   : > { %v1417_v15 = vmul.f32 %v675_v14, %v332_v13 }
 0x14b   : > { %v1255_v16 = vpack.i.bf16 0.0, %v1417_v15 }
 0x14f   : > { %1236 = vrot.lane.b32.xlu1 %v1225_v11, %s1317_s24  ;;  %1241 = vrot.lane.b32.xlu0 %v1225_v11, %s1318_s25 }
 0x150   : > { %1231 = vrot.lane.b32.xlu2 %v1225_v11, %s1319_s26 }
 0x157   : > { %1251 = vrot.lane.b32.xlu1 %v1225_v11, %s1320_s27  ;;  %1256 = vrot.lane.b32.xlu0 %v1255_v16, %s1316_s23 }
 0x158   : > { %1246 = vrot.lane.b32.xlu2 %v1225_v11, %s1321_s28 }
 0x15f   : > { %1266 = vrot.lane.b32.xlu1 %v1255_v16, %s1314_s19  ;;  %1271 = vrot.lane.b32.xlu0 %v1255_v16, %s1319_s26 }
 0x160   : > { %1261 = vrot.lane.b32.xlu2 %v1255_v16, %s1315_s20 }
 0x167   : > { %1286 = vrot.lane.b32.xlu1 %v1255_v16, %s1321_s28  ;;  %1281 = vrot.lane.b32.xlu0 %v1255_v16, %s1318_s25 }
 0x168   : > { %1276 = vrot.lane.b32.xlu2 %v1255_v16, %s1317_s24 }
 0x16f   : > { %927 = vperm.xlu0 %1295, %v924_v44  }
 0x170   : > { %1291 = vrot.lane.b32.xlu2 %v1255_v16, %s1320_s27 }
 0x1a2   : > { %v1217_v17 = vpop.permute.xlu2 %1216 }
 0x1a3   : > { %v1219_v18 = vunpack.i.h.bf16 %v1217_v17  ;;  %v1218_v19 = vunpack.i.l.bf16 %v1217_v17 }
 0x1a5   : > { %v887_v20 = vsel %vm886_vm13, %v1218_v19, %v1219_v18 }
 0x1a6   : > { %940 = vmatpush.msra.mxu3 %v887_v20 }
 0x1aa   : > { %v1421_v21 = vpop.permute.xlu2 %1231 }
 0x1ab   : > { %v1234_v29 = vunpack.i.h.bf16 %v1421_v21  ;;  %v1233_v30 = vunpack.i.l.bf16 %v1421_v21 }
 0x1ad   : > { %v809_v33 = vsel %vm808_vm0, %v1233_v30, %v1234_v29 }
 0x1b2   : > { %v1425_v24 = vpop.permute.xlu2 %1246 }
 0x1b3   : > { %v1249_v40 = vunpack.i.h.bf16 %v1425_v24  ;;  %v1248_v41 = vunpack.i.l.bf16 %v1425_v24 }
 0x1b5   : > { %v731_v46 = vsel %vm730_vm3, %v1248_v41, %v1249_v40 }
 0x1b9   : > { %v1423_v22 = vpop.permute.xlu1 %1226  ;;  %v1222_v23 = vpop.permute.xlu0 %1221 }
 0x1ba   : > { %v1229_v25 = vunpack.i.h.bf16 %v1423_v22  ;;  %v1228_v26 = vunpack.i.l.bf16 %v1423_v22  ;;  %v1224_v27 = vunpack.i.h.bf16 %v1222_v23  ;;  %v1223_v28 = vunpack.i.l.bf16 %v1222_v23  ;;  %v1262_v42 = vpop.permute.xlu2 %1261 }
 0x1bb   : > { %v1263_v47 = vunpack.i.l.bf16 %v1262_v42  ;;  %v1264_v54 = vunpack.i.h.bf16 %v1262_v42 }
 0x1bc   : > { %v861_v31 = vsel %vm860_vm14, %v1223_v28, %v1224_v27  ;;  %v835_v32 = vsel %vm834_vm15, %v1228_v26, %v1229_v25 }
 0x1bd   : > { %941 = vmatpush.msra.mxu3 %v861_v31  ;;  %v862_v60 = vsel %vm860_vm14, %v1224_v27, %v1263_v47  ;;  %v863_v61 = vsel %vm860_vm14, %v1263_v47, %v1264_v54 }
 0x1bf   : > { %942 = vmatpush.msra.mxu3 %v835_v32 }
 0x1c1   : > { %v1438_v34 = vpop.permute.xlu1 %1236  ;;  %v1440_v35 = vpop.permute.xlu0 %1241  ;;  %943 = vmatpush.msra.mxu3 %v809_v33 }
 0x1c2   : > { %v1239_v36 = vunpack.i.h.bf16 %v1438_v34  ;;  %v1238_v37 = vunpack.i.l.bf16 %v1438_v34  ;;  %v1244_v38 = vunpack.i.h.bf16 %v1440_v35  ;;  %v1243_v39 = vunpack.i.l.bf16 %v1440_v35  ;;  %v1277_v59 = vpop.permute.xlu2 %1276 }
 0x1c3   : > { %v1279_v5 = vunpack.i.h.bf16 %v1277_v59  ;;  %v1278_v6 = vunpack.i.l.bf16 %v1277_v59 }
 0x1c4   : > { %v783_v43 = vsel %vm782_vm1, %v1238_v37, %v1239_v36  ;;  %v757_v45 = vsel %vm756_vm2, %v1243_v39, %v1244_v38 }
 0x1c5   : > { %944 = vmatpush.msra.mxu3 %v783_v43  ;;  %v784_v12 = vsel %vm782_vm1, %v1239_v36, %v1278_v6  ;;  %v785_v13 = vsel %vm782_vm1, %v1278_v6, %v1279_v5 }
 0x1c7   : > { %945 = vmatpush.msra.mxu3 %v757_v45 }
 0x1c9   : > { %v1252_v48 = vpop.permute.xlu1 %1251  ;;  %v1257_v49 = vpop.permute.xlu0 %1256  ;;  %946 = vmatpush.msra.mxu3 %v731_v46 }
 0x1ca   : > { %v1254_v50 = vunpack.i.h.bf16 %v1252_v48  ;;  %v1253_v51 = vunpack.i.l.bf16 %v1252_v48  ;;  %v1259_v52 = vunpack.i.h.bf16 %v1257_v49  ;;  %v1258_v53 = vunpack.i.l.bf16 %v1257_v49  ;;  %v1292_v11 = vpop.permute.xlu2 %1291 }
 0x1cb   : > { %v1294_v21 = vunpack.i.h.bf16 %v1292_v11  ;;  %v1293_v22 = vunpack.i.l.bf16 %v1292_v11 }
 0x1cc   : > { %v705_v55 = vsel %vm704_vm4, %v1253_v51, %v1254_v50  ;;  %v888_v56 = vsel %vm886_vm13, %v1219_v18, %v1258_v53  ;;  %v889_v57 = vsel %vm886_vm13, %v1258_v53, %v1259_v52 }
 0x1cd   : > { %947 = vmatpush.msra.mxu3 %v705_v55  ;;  %960 = vmatpush.msrb.mxu0 %v888_v56  ;;  %v706_v28 = vsel %vm704_vm4, %v1254_v50, %v1293_v22 }
 0x1ce   : > { %980 = vmatpush.msrb.mxu1 %v889_v57 }
 0x1cf   : > { %948 = vmatpush.msra.mxu3 %v1411_v4  ;;  %961 = vmatpush.msrb.mxu0 %v862_v60 }
 0x1d0   : > { %981 = vmatpush.msrb.mxu1 %v863_v61  ;;  %1101 = vmatmul.msk.f32.vlgmr.msra.gmra.mxu3 %vm606_vm9, %v896_v58 }
 0x1d1   : > { %v1267_v62 = vpop.permute.xlu1 %1266  ;;  %v1272_v63 = vpop.permute.xlu0 %1271 }
 0x1d2   : > { %v1269_v0 = vunpack.i.h.bf16 %v1267_v62  ;;  %v1268_v1 = vunpack.i.l.bf16 %v1267_v62  ;;  %v1274_v2 = vunpack.i.h.bf16 %v1272_v63  ;;  %v1273_v3 = vunpack.i.l.bf16 %v1272_v63 }
 0x1d4   : > { %v836_v8 = vsel %vm834_vm15, %v1229_v25, %v1268_v1  ;;  %v837_v4 = vsel %vm834_vm15, %v1268_v1, %v1269_v0  ;;  %v810_v9 = vsel %vm808_vm0, %v1234_v29, %v1273_v3  ;;  %v811_v10 = vsel %vm808_vm0, %v1273_v3, %v1274_v2 }
 0x1d5   : > { %962 = vmatpush.msrb.mxu0 %v836_v8  ;;  %982 = vmatpush.msrb.mxu1 %v837_v4  ;;  %v707_v29 = vsel %vm704_vm4, %v1293_v22, %v1294_v21 }
 0x1d7   : > { %963 = vmatpush.msrb.mxu0 %v810_v9  ;;  %983 = vmatpush.msrb.mxu1 %v811_v10 }
 0x1d9   : > { %v1287_v14 = vpop.permute.xlu1 %1286  ;;  %v1282_v16 = vpop.permute.xlu0 %1281  ;;  %964 = vmatpush.msrb.mxu0 %v784_v12  ;;  %984 = vmatpush.msrb.mxu1 %v785_v13 }
 0x1da   : > { %v1289_v17 = vunpack.i.h.bf16 %v1287_v14  ;;  %v1288_v18 = vunpack.i.l.bf16 %v1287_v14  ;;  %v1284_v19 = vunpack.i.h.bf16 %v1282_v16  ;;  %v1283_v20 = vunpack.i.l.bf16 %v1282_v16 }
 0x1dc   : > { %v758_v23 = vsel %vm756_vm2, %v1244_v38, %v1283_v20  ;;  %v759_v25 = vsel %vm756_vm2, %v1283_v20, %v1284_v19  ;;  %v732_v26 = vsel %vm730_vm3, %v1249_v40, %v1288_v18  ;;  %v733_v27 = vsel %vm730_vm3, %v1288_v18, %v1289_v17 }
 0x1dd   : > { %965 = vmatpush.msrb.mxu0 %v758_v23  ;;  %985 = vmatpush.msrb.mxu1 %v759_v25 }
 0x1df   : > { %966 = vmatpush.msrb.mxu0 %v732_v26  ;;  %986 = vmatpush.msrb.mxu1 %v733_v27 }
 0x1e1   : > { %967 = vmatpush.msrb.mxu0 %v706_v28  ;;  %987 = vmatpush.msrb.mxu1 %v707_v29  ;;  %v928_v24 = vpop.permute.xlu0 %927 }
 0x1e3   : > { %968 = vmatpush.msrb.mxu0 %v1413_v7  ;;  %988 = vmatpush.msrb.mxu1 %v1417_v15 }
 0x1e4   : > { %1102 = vmatmul.msk.f32.vlgmr.msrb.gmra.mxu0 %vm606_vm9, %v896_v58  ;;  %1103 = vmatmul.msk.f32.vlgmr.msrb.gmra.mxu1 %vm606_vm9, %v896_v58 }
 0x253   : > { %v950_v30 = vpop.f32.mrf.mxu3 }
 0x254   : > { %v951_v31 = vadd.f32 %v950_v30, %v928_v24 }
 0x256   : > { %993 = vst [vmem:[%s264_s11] sm:$0xff] %v951_v31 }
 0x261   : > { %v970_v32 = vpop.f32.mrf.mxu0  ;;  %v990_v33 = vpop.f32.mrf.mxu1 }
 0x262   : > { %v971_v34 = vadd.f32 %v970_v32, %v928_v24  ;;  %v991_v35 = vadd.f32 %v990_v33, %v928_v24 }
 0x264   : > { %994 = vst [vmem:[%s264_s11 + $0x8] sm:$0xff] %v971_v34 }
 0x265   : > { %995 = vst [vmem:[%s264_s11 + $0x10] sm:$0xff] %v991_v35 }
 0x266 PF: > { %s17_s21 = sadd.s32 1, %s1302_s21  }
 0x267   : > { %p14_p4 = scmp.ge.s32.totalorder %s17_s21, 4  }
 0x269   :  { %16 = sbr.rel (!%p14_p4) target bundleno = 1 (0x1), region = 83 }

</bundles_post_ra>
